<compile_context>
chip_gen: v7x
topology: tpu7x:2x2x1
jax: 0.10.0
libtpu: 0.0.40
codegen_flags: <defaults>
</compile_context>

<pallas_src>
import functools

import jax
import jax.numpy as jnp
from jax.experimental import pallas as pl
from jax.experimental.pallas import tpu as pltpu


def _gnn_atomic_final_kernel(ww_ref, xw_ref, b_ref, out_ref, *, Bt):
    # ww_ref : (Bt, Nt, N*J)  VMEM, WW dtype   (contiguous view of WW)
    # xw_ref : (Bt, N*J, C)   VMEM, WW dtype   (precomputed x @ Wt, reordered)
    # b_ref  : (1, C)         VMEM, f32
    # out_ref: (Bt, Nt, C)    VMEM, f32
    for b in range(Bt):  # Bt is a small static python int
        acc = jnp.dot(ww_ref[b], xw_ref[b], preferred_element_type=jnp.float32)
        out_ref[b] = (acc + b_ref[...]).astype(out_ref.dtype)


def _vmem_capacity_bytes():
    """Per-core VMEM capacity; conservative fallback (v7x = 64 MiB)."""
    try:
        info = pltpu.get_tpu_info()
        cap = int(getattr(info, "vmem_capacity_bytes", 0))
        if cap > 0:
            return cap
    except Exception:
        pass
    return 64 << 20


def _pick_tiles(B, N, J, itemsize, ww_budget_bytes, align):
    """Pick (Bt graphs / step, Nt rows / step).

    The double-buffered WW block (2 * Bt * Nt * N*J * itemsize) must fit the
    budget.  Nt is either the full N or an `align`-multiple (8 for f32, 16 for
    bf16, 32 for 8-bit), with a ragged last tile handled by Pallas via
    pl.cdiv.  Bt > 1 only in the tiny-graph regime to amortise per-step cost.
    """
    per_row_bytes = 2 * N * J * itemsize  # double-buffered bytes per WW row

    def fits(bt, nt):
        return bt * nt * per_row_bytes <= ww_budget_bytes

    if fits(1, N):
        nt = N
    else:
        nt = int((ww_budget_bytes // per_row_bytes) // align) * align
        nt = int(min(max(align, nt), N))

    bt = 1
    if nt == N:
        for cand in range(min(B, 8), 1, -1):
            if B % cand == 0 and fits(cand, N):
                bt = cand
                break

    # v7x has 2 TensorCores sharing HBM: keep >= 2 parallel grid steps when
    # possible so the grid can be sharded across both cores.
    def steps(bt_, nt_):
        return (B // bt_) * pl.cdiv(N, nt_)

    if steps(bt, nt) < 2:
        if bt > 1:
            bt = 1
        elif N > align:
            half = pl.cdiv(N, 2)
            nt = min(N, max(align, ((half + align - 1) // align) * align))
    return bt, nt


def gnn_atomic_final_forward(WW, x, fc_weight, fc_bias):
    """WW: (B, N, N, J), x: (B, N, F), fc_weight: (C, J*F), fc_bias: (C,).
    Returns (WW, out) with out: (B, N, C) f32, matching the PyTorch forward.

    The kernel computes in WW's dtype.  To use the bf16 MXU path (and actually
    halve WW HBM traffic), pass WW already stored as bf16 upstream; f32
    accumulation is used either way.
    """
    B, N, N2, J = WW.shape
    assert N2 == N
    _, _, F = x.shape
    C, JF = fc_weight.shape
    assert JF == J * F
    NJ = N * J

    cdtype = jnp.dtype(WW.dtype)
    itemsize = cdtype.itemsize
    align = max(8, 32 // max(itemsize, 1))  # second-minor layout granule

    vmem_cap = _vmem_capacity_bytes()
    # TODO(synk): assumes get_tpu_info reports per-TensorCore VMEM; if v7x
    # reports per-chip the 0.9*cap clamp below still leaves headroom.
    ww_budget = int(vmem_cap * 0.55)
    Bt, Nt = _pick_tiles(B, N, J, itemsize, ww_budget, align)

    # Free contiguous view (no transpose, no cast): WW[b,m,n,j] -> (b, m, n*J+j).
    ww_flat = WW.reshape(B, N, NJ)

    # Precompute XW (tiny): XW[b, n*J + j, c] = sum_f x[b,n,f] * fc_weight[c, j*F+f].
    wt3 = jnp.transpose(fc_weight.reshape(C, J, F), (1, 2, 0)).astype(jnp.float32)
    xw = jnp.einsum("bnf,jfc->bnjc", x.astype(jnp.float32), wt3)
    xw = xw.reshape(B, NJ, C).astype(cdtype)
    bias2d = fc_bias.reshape(1, C).astype(jnp.float32)

    # Explicit scoped-VMEM limit covering the double-buffered blocks + headroom.
    block_bytes = (2 * Bt * Nt * NJ * itemsize      # WW (double buffered)
                   + 2 * Bt * NJ * C * itemsize     # XW
                   + 2 * C * 4                      # bias
                   + 2 * Bt * Nt * C * 4)           # out
    vmem_limit = int(min(max(block_bytes + (4 << 20), 32 << 20),
                         int(vmem_cap * 0.9)))

    kernel = functools.partial(_gnn_atomic_final_kernel, Bt=Bt)

    out = pl.pallas_call(
        kernel,
        out_shape=jax.ShapeDtypeStruct((B, N, C), jnp.float32),
        grid_spec=pltpu.PrefetchScalarGridSpec(
            num_scalar_prefetch=0,
            grid=(B // Bt, pl.cdiv(N, Nt)),
            in_specs=[
                pl.BlockSpec((Bt, Nt, NJ), lambda b, i: (b, i, 0)),
                pl.BlockSpec((Bt, NJ, C), lambda b, i: (b, 0, 0)),
                pl.BlockSpec((1, C), lambda b, i: (0, 0)),
            ],
            out_specs=pl.BlockSpec((Bt, Nt, C), lambda b, i: (b, i, 0)),
        ),
        compiler_params=pltpu.CompilerParams(
            dimension_semantics=("parallel", "parallel"),
            vmem_limit_bytes=vmem_limit,
        ),
    )(ww_flat, xw, bias2d)
    return WW, out


def _reference_forward(WW, x, fc_weight, fc_bias):
    # Pure-JAX reference replicating GMul + Linear.
    B, N, _, J = WW.shape
    ys = [jnp.einsum("bmn,bnf->bmf", WW[:, :, :, j], x) for j in range(J)]
    y = jnp.concatenate(ys, axis=-1)                  # (B, N, J*F)
    out = jnp.einsum("bnk,ck->bnc", y, fc_weight) + fc_bias
    return out


if __name__ == "__main__":
    # Shapes consistent with the module: feature_maps[0] = F = 8, J = 2,
    # n_classes = 4, batch B = 2, N = 16 nodes.
    B, N, F, J, C = 2, 16, 8, 2, 4

    key = jax.random.PRNGKey(0)
    k_ww, k_x, k_w, k_b = jax.random.split(key, 4)

    WW = jax.random.normal(k_ww, (B, N, N, J), dtype=jnp.float32)
    x = jax.random.normal(k_x, (B, N, F), dtype=jnp.float32)

    # Deterministic parameter init (uniform, like nn.Linear's default scale).
    fan_in = J * F
    bound = 1.0 / (fan_in ** 0.5)
    fc_weight = jax.random.uniform(k_w, (C, J * F), minval=-bound, maxval=bound,
                                   dtype=jnp.float32)
    fc_bias = jax.random.uniform(k_b, (C,), minval=-bound, maxval=bound,
                                 dtype=jnp.float32)

    ref = _reference_forward(WW, x, fc_weight, fc_bias)

    # f32 path: exact module semantics.
    ww_out, out = gnn_atomic_final_forward(WW, x, fc_weight, fc_bias)
    out = jax.block_until_ready(out)
    assert out.shape == (B, N, C)
    assert ww_out is WW
    assert jnp.allclose(out, ref, atol=1e-4, rtol=1e-4), "f32 kernel mismatch vs reference"

    # bf16 path: WW stored bf16 upstream -> half the WW HBM bytes, f32 MXU
    # accumulation.  Tolerance reflects bf16 quantisation of WW / XW (~1e-2).
    WW_bf16 = WW.astype(jnp.bfloat16)
    _, out_bf16 = gnn_atomic_final_forward(WW_bf16, x, fc_weight, fc_bias)
    out_bf16 = jax.block_until_ready(out_bf16)
    assert jnp.allclose(out_bf16, ref, atol=5e-2, rtol=5e-2), "bf16 kernel mismatch vs reference"

    print("KERNEL_OK")
</pallas_src>

<mosaic_0001>
module attributes {stable_mosaic.version = 11 : i64} {
  func.func @_gnn_atomic_final_kernel(%arg0: i32, %arg1: i32, %arg2: memref<1x16x32xf32, #tpu.memory_space<vmem>>, %arg3: memref<1x32x4xf32, #tpu.memory_space<vmem>>, %arg4: memref<1x4xf32, #tpu.memory_space<vmem>>, %arg5: memref<1x16x4xf32, #tpu.memory_space<vmem>>) attributes {dimension_semantics = [#tpu.dimension_semantics<parallel>, #tpu.dimension_semantics<parallel>], iteration_bounds = array<i64: 2, 1>, scalar_prefetch = 0 : i64, scratch_operands = 0 : i64, tpu.core_type = #tpu.core_type<tc>, window_params = [{transform_indices = @transform_0, window_bounds = array<i64: 1, 16, 32>}, {transform_indices = @transform_1, window_bounds = array<i64: 1, 32, 4>}, {pipeline_mode = #tpu.pipeline_mode<synchronous>, transform_indices = @transform_2, window_bounds = array<i64: 1, 4>}, {transform_indices = @transform_3, window_bounds = array<i64: 1, 16, 4>}]} {
    %c0 = arith.constant 0 : index
    %c0_0 = arith.constant 0 : index
    %c0_1 = arith.constant 0 : index
    %0 = vector.load %arg2[%c0, %c0_0, %c0_1] : memref<1x16x32xf32, #tpu.memory_space<vmem>>, vector<1x16x32xf32>
    %1 = vector.shape_cast %0 : vector<1x16x32xf32> to vector<16x32xf32>
    %c0_2 = arith.constant 0 : index
    %c0_3 = arith.constant 0 : index
    %c0_4 = arith.constant 0 : index
    %2 = vector.load %arg3[%c0_2, %c0_3, %c0_4] : memref<1x32x4xf32, #tpu.memory_space<vmem>>, vector<1x32x4xf32>
    %3 = vector.shape_cast %2 : vector<1x32x4xf32> to vector<32x4xf32>
    %cst = arith.constant dense<0.000000e+00> : vector<16x4xf32>
    %4 = tpu.matmul %1, %3, %cst {dimension_numbers = #tpu.dot_dimension_numbers<[1], [0], [0], [1], [0, 0, 1, 1], [], []>} : vector<16x32xf32>, vector<32x4xf32>, vector<16x4xf32> -> vector<16x4xf32>
    %c0_5 = arith.constant 0 : index
    %c0_6 = arith.constant 0 : index
    %5 = vector.load %arg4[%c0_5, %c0_6] : memref<1x4xf32, #tpu.memory_space<vmem>>, vector<1x4xf32>
    %6 = vector.broadcast %5 : vector<1x4xf32> to vector<16x4xf32>
    %7 = arith.addf %4, %6 : vector<16x4xf32>
    %c0_7 = arith.constant 0 : index
    %c0_8 = arith.constant 0 : index
    %c0_9 = arith.constant 0 : index
    %8 = vector.load %arg5[%c0_7, %c0_8, %c0_9] : memref<1x16x4xf32, #tpu.memory_space<vmem>>, vector<1x16x4xf32>
    %9 = vector.shape_cast %8 : vector<1x16x4xf32> to vector<16x4xf32>
    %10 = vector.shape_cast %7 : vector<16x4xf32> to vector<1x16x4xf32>
    tpu.vector_store %arg5[%c0_7, %c0_8, %c0_9], %10 {strides = array<i32>} : memref<1x16x4xf32, #tpu.memory_space<vmem>>, vector<1x16x4xf32>,
    return
  }
  func.func @transform_0(%arg0: i32, %arg1: i32) -> (i32, i32, i32) {
    %c0_i32 = arith.constant 0 : i32
    %c0_i32_0 = arith.constant 0 : i32
    return %arg0, %arg1, %c0_i32 : i32, i32, i32
  }
  func.func @transform_1(%arg0: i32, %arg1: i32) -> (i32, i32, i32) {
    %c0_i32 = arith.constant 0 : i32
    %c0_i32_0 = arith.constant 0 : i32
    %c0_i32_1 = arith.constant 0 : i32
    return %arg0, %c0_i32, %c0_i32_0 : i32, i32, i32
  }
  func.func @transform_2(%arg0: i32, %arg1: i32) -> (i32, i32) {
    %c0_i32 = arith.constant 0 : i32
    %c0_i32_0 = arith.constant 0 : i32
    %c0_i32_1 = arith.constant 0 : i32
    return %c0_i32, %c0_i32_0 : i32, i32
  }
  func.func @transform_3(%arg0: i32, %arg1: i32) -> (i32, i32, i32) {
    %c0_i32 = arith.constant 0 : i32
    %c0_i32_0 = arith.constant 0 : i32
    return %arg0, %arg1, %c0_i32 : i32, i32, i32
  }
}

</mosaic_0001>

<bundles_post_ra>
// kernel: tpu_custom_call.1
= control target key start
LH: loop header
LB: loop body
LE: loop exit
PB: predicated region body
PF: predicated region fallthrough
CT: control target
= control target key end

     0   :  { %s539_s12 = smov 0   ;;  %s541_s13 = smov 0   ;;  %s578_s0 = inlined_call_operand.vmem [shape: f32[2,16,32], index: 0, kind: input, shape index: {}]   ;;  %s579_s1 = inlined_call_operand.vmem [shape: f32[2,32,4], index: 1, kind: input, shape index: {}]   ;;  %s580_s2 = inlined_call_operand.vmem [shape: f32[1,4], index: 2, kind: input, shape index: {}]   ;;  %s581_s3 = inlined_call_operand.vmem [shape: f32[2,16,4], index: 3, kind: output, shape index: {}]  }
   0x1   :  { %s543_s14 = smov 0  }
   0x2 LB: > { %s25_s15 = sadd.s32 1, %s513_s13  ;;  %p431_p0 = scmp.ge.s32.totalorder %s517_s14, 1  ;;  %s517_s14 = sphi %s543_s14, %s13_s14   ;;  %s513_s13 = sphi %s541_s13, %s583_s13   ;;  %s509_s12 = sphi %s539_s12, %s582_s12  }
   0x3   : > { %p27_p1 = scmp.ge.s32.totalorder %s25_s15, 2  ;;  %p168_p2 = scmp.lt.s32.totalorder %s517_s14, 3 }
   0x5   : > { %s585_s15 = smov (%p27_p1, %s25_s15), 0  ;;  %p169_p3 = pnand %p431_p0, %p168_p2 }
   0x6   : > { %p206_p4 = scmp.lt.s32.totalorder (!%p169_p3), %s509_s12, 1  ;;  %vm243_vm0 = vcmask (!%p169_p3), 261120   ;;  %v438_v8 = vld [vmem:[%s580_s2] ss:$0 sm:$0xff] (!%p169_p3)  ;;  %vm325_vm1 = vcmask (!%p169_p3), 31744  }
   0x7   : > { %172 = sbr.rel (%p169_p3) target bundleno = 244 (0xf4), region = 32 }
   0xe   : > { %s587_s12 = smov (!%p206_p4, %s509_s12), 1 }
   0xf   : > { %s444_s16 = sshll.u32 %s587_s12, 5  ;;  %s443_s17 = sshll.u32 %s587_s12, 4 }
  0x10   : > { %s219_s20 = scalar_lea.vmem %s579_s1, %s444_s16  ;;  %s213_s23 = scalar_lea.vmem %s578_s0, %s443_s17 }
  0x11   : > { %v232_v0 = vld [vmem:[%s219_s20] sm:$0xff]  ;;  %v233_v1 = vld [vmem:[%s219_s20 + $0x8] sm:$0xff]  ;;  %v234_v2 = vld [vmem:[%s219_s20 + $0x10] sm:$0xff]  ;;  %s228_s28 = scalar_lea.vmem %s581_s3, %s443_s17 }
  0x12   : > { %v463_v3 = vpack.c.bf16 %v233_v1, %v232_v0  ;;  %v235_v4 = vld [vmem:[%s219_s20 + $0x18] sm:$0xff]  ;;  %v230_v5 = vld [vmem:[%s213_s23] sm:$0xff]  ;;  %v231_v7 = vld [vmem:[%s213_s23 + $0x8] sm:$0xff] }
  0x13   : > { %v467_v6 = vpack.c.bf16 %v235_v4, %v234_v2  ;;  %460 = vmatprep.mubr.msk.f32.mxu0 %vm243_vm0, %v230_v5 }
  0x14   : > { %464 = vmatprep.subr.bf16.mxu0 %v463_v3 }
  0x15   : > { %466 = vmatpush3.bf16.msra.mxu0 %v463_v3 }
  0x16   : > { %468 = vmatprep.subr.bf16.mxu0 %v467_v6 }
  0x19   : > { %470 = vmatpush3.bf16.msra.mxu0 %v467_v6 }
  0x1c   : > { %461 = vmatmul.mubr.msk.f32.vlgmr.msra.gmra.mrb[0].mxu0 %vm243_vm0, %v231_v7 }
  0xef   : > { %v462_v9 = vpop.f32.mrb[0].mxu0 }
  0xf0   : > { %v322_v10 = vadd.f32 %v462_v9, %v438_v8  ;;  %v316_v11 = vpop.f32.mrb[1].mxu0 }
  0xf1   : > { %v317_v12 = vadd.f32 %v438_v8, %v316_v11 }
  0xf2   : > { %327 = vst.msk [vmem:[%s228_s28 + $0x8] sm:$0xff] %vm325_vm1, %v322_v10 }
  0xf3   : > { %326 = vst.msk [vmem:[%s228_s28] sm:$0xff] %vm325_vm1, %v317_v12 }
  0xf4 PF: > { %s13_s14 = sadd.s32 1, %s517_s14   ;;  %s582_s12 = smov %s513_s13 }
  0xf5   : > { %p10_p5 = scmp.ge.s32.totalorder %s13_s14, 4   ;;  %s583_s13 = smov %s585_s15 }
  0xf7   :  { %12 = sbr.rel (!%p10_p5) target bundleno = 2 (0x2), region = 65 }

</bundles_post_ra>
